<compile_context>
chip_gen: v7x
topology: tpu7x:2x2x1
jax: 0.10.0
libtpu: 0.0.40
codegen_flags: <defaults>
</compile_context>

<pallas_src>
import math

import jax
import jax.numpy as jnp
from jax import lax
from jax.experimental import pallas as pl
from jax.experimental.pallas import tpu as pltpu


def _round_up(a, b):
    return (a + b - 1) // b * b


# ---------------------------------------------------------------------------
# Stage 1:  support  = x @ W + b      -> bf16  (n_sup, f_pad)
#           self_sup = x @ W_self     -> f32   (n_sup, f_pad)   (optional, fused)
# ---------------------------------------------------------------------------
def _support_kernel(x_ref, w_ref, b_ref, s_ref):
    xw = jnp.dot(x_ref[...], w_ref[...], preferred_element_type=jnp.float32)
    s_ref[...] = (xw + b_ref[...]).astype(s_ref.dtype)


def _support_self_kernel(x_ref, w_ref, ws_ref, b_ref, s_ref, ss_ref):
    x = x_ref[...]
    xw = jnp.dot(x, w_ref[...], preferred_element_type=jnp.float32)
    s_ref[...] = (xw + b_ref[...]).astype(s_ref.dtype)
    ss_ref[...] = jnp.dot(
        x, ws_ref[...], preferred_element_type=jnp.float32).astype(ss_ref.dtype)


def _stage1(xp, wp, bp, wsp, *, tr, sup_dtype):
    n_sup, k_pad = xp.shape
    f_pad = wp.shape[1]
    has_self = wsp is not None

    in_specs = [
        pl.BlockSpec((tr, k_pad), lambda i: (i, 0)),      # x rows
        pl.BlockSpec((k_pad, f_pad), lambda i: (0, 0)),   # W (resident)
    ]
    args = [xp, wp]
    if has_self:
        in_specs.append(pl.BlockSpec((k_pad, f_pad), lambda i: (0, 0)))  # W_self
        args.append(wsp)
    in_specs.append(pl.BlockSpec((1, f_pad), lambda i: (0, 0)))          # bias
    args.append(bp)

    row_spec = pl.BlockSpec((tr, f_pad), lambda i: (i, 0))
    if has_self:
        out_shape = (jax.ShapeDtypeStruct((n_sup, f_pad), sup_dtype),
                     jax.ShapeDtypeStruct((n_sup, f_pad), jnp.float32))
        out_specs = (row_spec, row_spec)
        kernel = _support_self_kernel
    else:
        out_shape = jax.ShapeDtypeStruct((n_sup, f_pad), sup_dtype)
        out_specs = row_spec
        kernel = _support_kernel

    mults = 2 if has_self else 1
    flops = 2 * n_sup * k_pad * f_pad * mults
    bytes_accessed = (xp.size * xp.dtype.itemsize
                      + mults * wp.size * wp.dtype.itemsize
                      + bp.size * 4
                      + n_sup * f_pad * (2 + (4 if has_self else 0)))

    return pl.pallas_call(
        kernel,
        out_shape=out_shape,
        grid_spec=pltpu.PrefetchScalarGridSpec(
            num_scalar_prefetch=0,
            grid=(pl.cdiv(n_sup, tr),),
            in_specs=in_specs,
            out_specs=out_specs,
        ),
        compiler_params=pltpu.CompilerParams(
            dimension_semantics=("parallel",),
            vmem_limit_bytes=32 * 1024 * 1024,
        ),
        cost_estimate=pl.CostEstimate(flops=flops, transcendentals=0,
                                      bytes_accessed=bytes_accessed),
    )(*args)


# ---------------------------------------------------------------------------
# Stage 2:  out = G @ support (+ bias) (+ self_sup), activation fused.
# G is read unpadded in its native dtype; cast to bf16 per tile in-kernel.
# ---------------------------------------------------------------------------
def _make_spmm_kernel(*, n, tk, resident, has_self, act):
    ragged = (n % tk) != 0

    def kernel(*refs):
        if has_self:
            g_ref, s_ref, ss_ref, b_ref, o_ref = refs
        else:
            g_ref, s_ref, b_ref, o_ref = refs
        k = pl.program_id(1)

        @pl.when(k == 0)
        def _init():
            o_ref[...] = jnp.zeros_like(o_ref)

        g = g_ref[...]
        if ragged:
            # Boundary tile of the unpadded G: zero the out-of-bounds reduction
            # columns so garbage from the partial DMA cannot pollute valid rows.
            col = lax.broadcasted_iota(jnp.int32, g.shape, 1) + k * tk
            g = jnp.where(col < n, g, 0)
        g = g.astype(jnp.bfloat16)            # feed the MXU in bf16 (in-kernel cast)

        if resident:
            s = s_ref[pl.ds(pl.multiple_of(k * tk, tk), tk), :]
        else:
            s = s_ref[...]

        # Accumulate directly into the f32 output block (resident across k).
        o_ref[...] += jnp.dot(g, s, preferred_element_type=jnp.float32)

        @pl.when(k == pl.num_programs(1) - 1)
        def _finalize():
            r = o_ref[...] + b_ref[...]
            if has_self:
                r = r + ss_ref[...]
            o_ref[...] = act(r)

    return kernel


def _stage2(G, support, bp, self_sup, *, n, f_pad, tm, tk, act):
    n_sup = support.shape[0]
    has_self = self_sup is not None
    rows = pl.cdiv(n, tm)
    kblk = pl.cdiv(n, tk)
    n_out = rows * tm                         # output padded to whole row blocks

    live = (2 * tm * tk * G.dtype.itemsize    # G tile (double-buffered)
            + 2 * tk * f_pad * support.dtype.itemsize
            + 2 * tm * f_pad * 4
            + (2 * tm * f_pad * 4 if has_self else 0))
    resident = (rows > 1) and (
        live + 2 * n_sup * f_pad * support.dtype.itemsize <= 24 * 1024 * 1024)

    if resident:
        s_spec = pl.BlockSpec((n_sup, f_pad), lambda i, k: (0, 0))   # whole support
    else:
        s_spec = pl.BlockSpec((tk, f_pad), lambda i, k: (k, 0))

    in_specs = [
        pl.BlockSpec((tm, tk), lambda i, k: (i, k)),                 # G tile (native dtype)
        s_spec,
    ]
    args = [G, support]
    if has_self:
        in_specs.append(pl.BlockSpec((tm, f_pad), lambda i, k: (i, 0)))
        args.append(self_sup)
    in_specs.append(pl.BlockSpec((1, f_pad), lambda i, k: (0, 0)))   # bias
    args.append(bp)

    kernel = _make_spmm_kernel(n=n, tk=tk, resident=resident,
                               has_self=has_self, act=act)

    flops = 2 * n * n * f_pad
    bytes_accessed = (n * n * G.dtype.itemsize
                      + (1 if resident else rows) * n_sup * f_pad
                      * support.dtype.itemsize
                      + n_out * f_pad * 4
                      + (n_out * f_pad * 4 if has_self else 0))

    return pl.pallas_call(
        kernel,
        out_shape=jax.ShapeDtypeStruct((n_out, f_pad), jnp.float32),
        grid_spec=pltpu.PrefetchScalarGridSpec(
            num_scalar_prefetch=0,
            grid=(rows, kblk),                                       # reduction last
            in_specs=in_specs,
            out_specs=pl.BlockSpec((tm, f_pad), lambda i, k: (i, 0)),
        ),
        compiler_params=pltpu.CompilerParams(
            dimension_semantics=("parallel", "arbitrary"),
            vmem_limit_bytes=32 * 1024 * 1024,
        ),
        cost_estimate=pl.CostEstimate(flops=flops, transcendentals=0,
                                      bytes_accessed=bytes_accessed),
    )(*args)


# --------------------------------- wrapper ------------------------------------
def hgraph_conv_bs(x, weight, G, bias=None, self_weight=None,
                   activation=None, res=False,
                   mxu_dtype=jnp.bfloat16, tm=1024, tk=1024, tr=1024):
    """out = sigma(G @ (x@W + b) (+ x@W_self) (+ b)) (+ x if res)."""
    N, in_ft = x.shape
    out_ft = weight.shape[1]
    act = activation if activation is not None else (lambda v: v)

    k_pad = _round_up(in_ft, 128)      # lane-dense contraction dim (stage 1)
    f_pad = _round_up(out_ft, 128)     # lane-dense feature dim (unmasked vst)

    # ---- stage-2 tile selection -------------------------------------------
    # Small problems (N <= tile): use exact full-extent blocks (always legal).
    # Large problems: fixed 128-aligned tiles; ragged boundary tiles of the
    # UNPADDED G are handled in-kernel (column mask) / sliced off (rows).
    if N <= tk:
        tk = N
    else:
        tk = max(128, (tk // 128) * 128)
    if N <= tm:
        tm = N
    else:
        tm = max(8, (tm // 8) * 8)
    # Keep the live working set comfortably inside 32 MiB scoped VMEM
    # (important on v7x, where physical VMEM is only 64 MiB).
    def _live(tm_):
        return (2 * tm_ * tk * G.dtype.itemsize + 2 * tk * f_pad * 2
                + 2 * tm_ * f_pad * 4
                + (2 * tm_ * f_pad * 4 if self_weight is not None else 0))
    while _live(tm) > 24 * 1024 * 1024 and tm > 256:
        tm = max(256, (tm // 2) // 8 * 8)
    # TODO(synk): add an f-blocking grid axis for very large out_features.

    n_sup = _round_up(N, tk)           # support rows = whole number of k tiles
    tr = min(tr, n_sup)

    # Only the small operands are padded/cast in the wrapper; G is passed raw.
    xp = jnp.pad(x, ((0, n_sup - N), (0, k_pad - in_ft))).astype(mxu_dtype)
    wp = jnp.pad(weight, ((0, k_pad - in_ft), (0, f_pad - out_ft))).astype(mxu_dtype)
    if bias is not None:
        bp = jnp.pad(bias.astype(jnp.float32), (0, f_pad - out_ft)).reshape(1, f_pad)
    else:
        bp = jnp.zeros((1, f_pad), jnp.float32)

    if self_weight is not None:
        wsp = jnp.pad(self_weight,
                      ((0, k_pad - in_ft), (0, f_pad - out_ft))).astype(mxu_dtype)
        support, self_sup = _stage1(xp, wp, bp, wsp, tr=tr, sup_dtype=mxu_dtype)
    else:
        support = _stage1(xp, wp, bp, None, tr=tr, sup_dtype=mxu_dtype)
        self_sup = None

    out = _stage2(G, support, bp, self_sup, n=N, f_pad=f_pad, tm=tm, tk=tk, act=act)
    out = out[:N, :out_ft]

    # TODO(synk): BatchNorm1d (withbn=True) not implemented — stateful running
    # statistics have no clean pure-forward Pallas equivalent.

    if res:
        assert in_ft == out_ft, "res=True requires in_features == out_features"
        out = out + x.astype(out.dtype)
    return out.astype(x.dtype)


# --------------------------------- reference ----------------------------------
def reference(x, weight, G, bias=None, self_weight=None,
              activation=None, res=False, dt=jnp.bfloat16):
    """Pure-JAX reference on the kernel's bf16-MXU / f32-accumulate path."""
    act = activation if activation is not None else (lambda v: v)
    support = jnp.dot(x.astype(dt), weight.astype(dt),
                      preferred_element_type=jnp.float32)
    if bias is not None:
        support = support + bias
    out = jnp.dot(G.astype(dt), support.astype(dt),
                  preferred_element_type=jnp.float32)
    if self_weight is not None:
        out = out + jnp.dot(x.astype(dt), self_weight.astype(dt),
                            preferred_element_type=jnp.float32)
    if bias is not None:
        out = out + bias
    out = act(out)
    if res:
        out = out + x
    return out


if __name__ == "__main__":
    key = jax.random.PRNGKey(0)

    # --- case 1: default config (bias only), N not a multiple of 8/128 -------
    N, in_ft, out_ft = 48, 16, 32
    k1, k2, k3, k4, key = jax.random.split(key, 5)
    stdv = 1.0 / math.sqrt(out_ft)   # matches reset_parameters()
    weight = jax.random.uniform(k1, (in_ft, out_ft), jnp.float32, -stdv, stdv)
    bias = jax.random.uniform(k2, (out_ft,), jnp.float32, -stdv, stdv)
    x = jax.random.normal(k3, (N, in_ft), jnp.float32)
    G = jax.random.normal(k4, (N, N), jnp.float32)

    out = jax.block_until_ready(hgraph_conv_bs(x, weight, G, bias=bias))
    ref = reference(x, weight, G, bias=bias)
    assert out.shape == (N, out_ft)
    assert jnp.allclose(out, ref, atol=2e-2, rtol=2e-2), "case 1 mismatch vs reference"

    # --- case 2: withloop + bias + res + relu, multi-block ragged tiling -----
    N, in_ft, out_ft = 300, 32, 32
    k1, k2, k3, k4, k5, key = jax.random.split(key, 6)
    stdv = 1.0 / math.sqrt(out_ft)
    weight = jax.random.uniform(k1, (in_ft, out_ft), jnp.float32, -stdv, stdv)
    self_weight = jax.random.uniform(k2, (in_ft, out_ft), jnp.float32, -stdv, stdv)
    bias = jax.random.uniform(k3, (out_ft,), jnp.float32, -stdv, stdv)
    x = jax.random.normal(k4, (N, in_ft), jnp.float32)
    G = jax.random.normal(k5, (N, N), jnp.float32) / math.sqrt(N)

    out = jax.block_until_ready(
        hgraph_conv_bs(x, weight, G, bias=bias, self_weight=self_weight,
                       activation=jax.nn.relu, res=True, tm=128, tk=128))
    ref = reference(x, weight, G, bias=bias, self_weight=self_weight,
                    activation=jax.nn.relu, res=True)
    assert out.shape == (N, out_ft)
    assert jnp.allclose(out, ref, atol=2e-2, rtol=2e-2), "case 2 mismatch vs reference"

    print("KERNEL_OK")
</pallas_src>

<mosaic_0001>
module attributes {stable_mosaic.version = 11 : i64} {
  func.func @_support_kernel(%arg0: i32, %arg1: memref<48x128xbf16, #tpu.memory_space<vmem>>, %arg2: memref<128x128xbf16, #tpu.memory_space<vmem>>, %arg3: memref<1x128xf32, #tpu.memory_space<vmem>>, %arg4: memref<48x128xbf16, #tpu.memory_space<vmem>>) attributes {dimension_semantics = [#tpu.dimension_semantics<parallel>], iteration_bounds = array<i64: 1>, scalar_prefetch = 0 : i64, scratch_operands = 0 : i64, tpu.core_type = #tpu.core_type<tc>, window_params = [{transform_indices = @transform_0, window_bounds = array<i64: 48, 128>}, {pipeline_mode = #tpu.pipeline_mode<synchronous>, transform_indices = @transform_1, window_bounds = array<i64: 128, 128>}, {pipeline_mode = #tpu.pipeline_mode<synchronous>, transform_indices = @transform_2, window_bounds = array<i64: 1, 128>}, {transform_indices = @transform_3, window_bounds = array<i64: 48, 128>}]} {
    %c0 = arith.constant 0 : index
    %c0_0 = arith.constant 0 : index
    %0 = vector.load %arg1[%c0, %c0_0] : memref<48x128xbf16, #tpu.memory_space<vmem>>, vector<48x128xbf16>
    %c0_1 = arith.constant 0 : index
    %c0_2 = arith.constant 0 : index
    %1 = vector.load %arg2[%c0_1, %c0_2] : memref<128x128xbf16, #tpu.memory_space<vmem>>, vector<128x128xbf16>
    %cst = arith.constant dense<0.000000e+00> : vector<48x128xf32>
    %2 = tpu.matmul %0, %1, %cst {dimension_numbers = #tpu.dot_dimension_numbers<[1], [0], [0], [1], [0, 0, 1, 1], [], []>} : vector<48x128xbf16>, vector<128x128xbf16>, vector<48x128xf32> -> vector<48x128xf32>
    %c0_3 = arith.constant 0 : index
    %c0_4 = arith.constant 0 : index
    %3 = vector.load %arg3[%c0_3, %c0_4] : memref<1x128xf32, #tpu.memory_space<vmem>>, vector<1x128xf32>
    %4 = vector.broadcast %3 : vector<1x128xf32> to vector<48x128xf32>
    %5 = arith.addf %2, %4 : vector<48x128xf32>
    %6 = arith.truncf %5 : vector<48x128xf32> to vector<48x128xbf16>
    %c0_5 = arith.constant 0 : index
    %c0_6 = arith.constant 0 : index
    %7 = vector.load %arg4[%c0_5, %c0_6] : memref<48x128xbf16, #tpu.memory_space<vmem>>, vector<48x128xbf16>
    tpu.vector_store %arg4[%c0_5, %c0_6], %6 {strides = array<i32>} : memref<48x128xbf16, #tpu.memory_space<vmem>>, vector<48x128xbf16>,
    return
  }
  func.func @transform_0(%arg0: i32) -> (i32, i32) {
    %c0_i32 = arith.constant 0 : i32
    %c0_i32_0 = arith.constant 0 : i32
    return %arg0, %c0_i32 : i32, i32
  }
  func.func @transform_1(%arg0: i32) -> (i32, i32) {
    %c0_i32 = arith.constant 0 : i32
    %c0_i32_0 = arith.constant 0 : i32
    %c0_i32_1 = arith.constant 0 : i32
    return %c0_i32, %c0_i32_0 : i32, i32
  }
  func.func @transform_2(%arg0: i32) -> (i32, i32) {
    %c0_i32 = arith.constant 0 : i32
    %c0_i32_0 = arith.constant 0 : i32
    %c0_i32_1 = arith.constant 0 : i32
    return %c0_i32, %c0_i32_0 : i32, i32
  }
  func.func @transform_3(%arg0: i32) -> (i32, i32) {
    %c0_i32 = arith.constant 0 : i32
    %c0_i32_0 = arith.constant 0 : i32
    return %arg0, %c0_i32 : i32, i32
  }
}

</mosaic_0001>

<bundles_post_ra>
// kernel: tpu_custom_call.1
= control target key start
LH: loop header
LB: loop body
LE: loop exit
PB: predicated region body
PF: predicated region fallthrough
CT: control target
= control target key end

     0   :  { %8 = vsyncpa [#allocation3], 0  ;;  %s508_s0 = inlined_call_operand.hbm [shape: bf16[48,128], index: 0, kind: input, shape index: {}]   ;;  %s509_s1 = inlined_call_operand.hbm [shape: bf16[128,128], index: 1, kind: input, shape index: {}]   ;;  %s510_s2 = inlined_call_operand.vmem [shape: f32[1,128], index: 2, kind: input, shape index: {}]   ;;  %s511_s3 = inlined_call_operand.hbm [shape: bf16[48,128], index: 3, kind: output, shape index: {}]  }
   0x1   :  { %9 = vsyncpa [#allocation6], 0 }
   0x2   :  { %10 = vsyncpa [#allocation4], 0  ;;  %s430_s12 = smov [#allocation2]   ;;  %s358_s16 = scalar_lea.hbm %s508_s0, 384 }
   0x3   :  { %s16_s13 = sshll.u32 %s430_s12, 4  ;;  %p359_p0 = scmp.ne.s32.totalorder %s508_s0, %s358_s16  ;;  %s17_s13 = int_to_ptr.vmem [resolvable:$true] %s16_s13 }
   0x4   :  { %p362_p1 = scmp.lt.u32.totalorder %s358_s16, %s508_s0 }
   0x6   :  { %p364_p2 = pnand %p362_p1, %p359_p0 }
   0x8   :  { %367 = shalt.err (!%p364_p2)
}
   0x9   :  { %s368_s21 = scalar_lea.vmem %s17_s13, 384  ;;  %p373_p4 = scmp.lt.s32.totalorder %s17_s13, %s17_s13 }
   0xa   :  { %p369_p3 = scmp.ne.s32.totalorder %s17_s13, %s368_s21  ;;  %p374_p5 = scmp.lt.s32.totalorder %s368_s21, %s368_s21 }
   0xc   :  { %p375_p6 = por %p374_p5, %p373_p4 }
   0xe   :  { %p376_p7 = pnand %p375_p6, %p369_p3 }
  0x10   :  { %379 = shalt.err (!%p376_p7)
}
  0x11   :  { %s431_s22 = smov 64   ;;  %s432_s23 = smov 4  }
  0x12   :  { %22 = dma.hbm_to_vmem [thread:$0]  %s508_s0, 384, %s17_s13, [#allocation3], %s431_s22, %s431_s22, %s432_s23  }
  0x13   :  { %s433_s26 = smov [#allocation5]   ;;  %s380_s30 = scalar_lea.hbm %s509_s1, 1024 }
  0x14   :  { %s28_s27 = sshll.u32 %s433_s26, 4  ;;  %p381_p8 = scmp.ne.s32.totalorder %s509_s1, %s380_s30  ;;  %s29_s27 = int_to_ptr.vmem [resolvable:$true] %s28_s27 }
  0x15   :  { %p384_p9 = scmp.lt.u32.totalorder %s380_s30, %s509_s1 }
  0x17   :  { %p386_p10 = pnand %p384_p9, %p381_p8 }
  0x19   :  { %389 = shalt.err (!%p386_p10)
}
  0x1a   :  { %s390_s8 = scalar_lea.vmem %s29_s27, 1024  ;;  %p395_p12 = scmp.lt.s32.totalorder %s29_s27, %s29_s27 }
  0x1b   :  { %p391_p11 = scmp.ne.s32.totalorder %s29_s27, %s390_s8  ;;  %p396_p13 = scmp.lt.s32.totalorder %s390_s8, %s390_s8 }
  0x1d   :  { %p397_p0 = por %p396_p13, %p395_p12 }
  0x1f   :  { %p398_p1 = pnand %p397_p0, %p391_p11 }
  0x21   :  { %401 = shalt.err (!%p398_p1)
}
  0x22   :  { %34 = dma.hbm_to_vmem [thread:$0]  %s509_s1, 1024, %s29_s27, [#allocation6], %s431_s22, %s431_s22, %s432_s23  }
  0x23   :  { %424 = dma.done.wait [#allocation3], 384  }
  0x24   :  { %425 = vsyncadd [#allocation3], 4294966912 }
  0x25   :  { %426 = dma.done.wait [#allocation6], 1024  }
  0x26   :  { %427 = vsyncadd [#allocation6], 4294966272  ;;  %v434_v0 = vmov 0.0   ;;  %vm435_vm0 = vmmov 0   ;;  %v347_v1 = vld [vmem:[#allocation5] sm:$0xff]   ;;  %v348_v2 = vld [vmem:[#allocation5 + $0x8] sm:$0xff]  }
  0x27   :  { %324 = vmatprep.subr.bf16.mxu1 %v434_v0  ;;  %296 = vmatprep.subr.bf16.mxu0 %v434_v0  ;;  %v349_v3 = vld [vmem:[#allocation5 + $0x10] sm:$0xff]   ;;  %v350_v4 = vld [vmem:[#allocation5 + $0x18] sm:$0xff]   ;;  %v351_v5 = vld [vmem:[#allocation5 + $0x20] sm:$0xff]  }
  0x28   :  { %316 = vmatprep.mubr.msk.bf16.mxu1 %vm435_vm0, %v434_v0  ;;  %312 = vmatprep.mubr.msk.bf16.mxu0 %vm435_vm0, %v434_v0  ;;  %v352_v6 = vld [vmem:[#allocation5 + $0x28] sm:$0xff]   ;;  %v353_v7 = vld [vmem:[#allocation5 + $0x30] sm:$0xff]   ;;  %v354_v8 = vld [vmem:[#allocation5 + $0x38] sm:$0xff]  }
  0x29   :  { %332 = vmatpush3.bf16.msra.mxu1 %v347_v1  ;;  %297 = vmatpush3.bf16.msra.mxu0 %v347_v1  ;;  %v355_v9 = vld [vmem:[#allocation2 + $0x8] sm:$0xff]   ;;  %v356_v10 = vld [vmem:[#allocation2] sm:$0xff]   ;;  %v357_v11 = vld [vmem:[#allocation2 + $0x10] sm:$0xff]  }
  0x2a   :  { %325 = vmatprep.subr.bf16.mxu1 %v434_v0  ;;  %298 = vmatprep.subr.bf16.mxu0 %v434_v0  ;;  %v244_v12 = vld [vmem:[%s510_s2] ss:$0 sm:$0xff]  ;;  %s436_s2 = smov [#allocation7]  }
  0x2b   :  { %s231_s11 = sshll.u32 %s436_s2, 4  ;;  %s232_s11 = int_to_ptr.vmem [resolvable:$true] %s231_s11 }
  0x2c   :  { %s402_s12 = scalar_lea.vmem %s232_s11, 384  ;;  %p407_p3 = scmp.lt.s32.totalorder %s232_s11, %s232_s11 }
  0x2d   :  { %333 = vmatpush3.bf16.msra.mxu1 %v348_v2  ;;  %299 = vmatpush3.bf16.msra.mxu0 %v348_v2  ;;  %p403_p2 = scmp.ne.s32.totalorder %s232_s11, %s402_s12  ;;  %p408_p4 = scmp.lt.s32.totalorder %s402_s12, %s402_s12 }
  0x2e   :  { %326 = vmatprep.subr.bf16.mxu1 %v434_v0  ;;  %300 = vmatprep.subr.bf16.mxu0 %v434_v0 }
  0x2f   :  { %p409_p5 = por %p408_p4, %p407_p3 }
  0x31   :  { %334 = vmatpush3.bf16.msra.mxu1 %v349_v3  ;;  %301 = vmatpush3.bf16.msra.mxu0 %v349_v3  ;;  %p410_p6 = pnand %p409_p5, %p403_p2 }
  0x32   :  { %327 = vmatprep.subr.bf16.mxu1 %v434_v0  ;;  %302 = vmatprep.subr.bf16.mxu0 %v434_v0 }
  0x35   :  { %335 = vmatpush3.bf16.msra.mxu1 %v350_v4  ;;  %303 = vmatpush3.bf16.msra.mxu0 %v350_v4 }
  0x36   :  { %328 = vmatprep.subr.bf16.mxu1 %v434_v0  ;;  %304 = vmatprep.subr.bf16.mxu0 %v434_v0 }
  0x39   :  { %336 = vmatpush3.bf16.msra.mxu1 %v351_v5  ;;  %305 = vmatpush3.bf16.msra.mxu0 %v351_v5 }
  0x3a   :  { %329 = vmatprep.subr.bf16.mxu1 %v434_v0  ;;  %306 = vmatprep.subr.bf16.mxu0 %v434_v0 }
  0x3d   :  { %337 = vmatpush3.bf16.msra.mxu1 %v352_v6  ;;  %307 = vmatpush3.bf16.msra.mxu0 %v352_v6 }
  0x3e   :  { %330 = vmatprep.subr.bf16.mxu1 %v434_v0  ;;  %308 = vmatprep.subr.bf16.mxu0 %v434_v0 }
  0x41   :  { %338 = vmatpush3.bf16.msra.mxu1 %v353_v7  ;;  %309 = vmatpush3.bf16.msra.mxu0 %v353_v7 }
  0x42   :  { %331 = vmatprep.subr.bf16.mxu1 %v434_v0  ;;  %310 = vmatprep.subr.bf16.mxu0 %v434_v0 }
  0x45   :  { %339 = vmatpush3.bf16.msra.mxu1 %v354_v8  ;;  %311 = vmatpush3.bf16.msra.mxu0 %v354_v8 }
  0x48   :  { %317 = vmatmul.mubr.bf16.vlgmr.msra.gmra.mrb[0].mxu1 %v355_v9  ;;  %313 = vmatmul.mubr.bf16.vlgmr.msra.gmra.mrb[0].mxu0 %v356_v10 }
  0x49   :  { %320 = vmatprep.mubr.msk.bf16.mxu1 %vm435_vm0, %v434_v0 }
  0x50   :  { %321 = vmatmul.mubr.bf16.gmra.mrb[4].mxu1 %v357_v11 }
 0x11b   :  { %v181_v13 = vpop.f32.mrb[0].mxu1  ;;  %v173_v14 = vpop.f32.mrb[0].mxu0 }
 0x11c   :  { %v318_v15 = vpop.f32.mrb[1].mxu1  ;;  %v174_v16 = vadd.f32 %v244_v12, %v173_v14  ;;  %v314_v17 = vpop.f32.mrb[1].mxu0  ;;  %v182_v20 = vadd.f32 %v244_v12, %v181_v13 }
 0x11d   :  { %v184_v18 = vpop.f32.mrb[2].mxu1  ;;  %v176_v19 = vpop.f32.mrb[2].mxu0 }
 0x11e   :  { %v185_v21 = vadd.f32 %v244_v12, %v184_v18  ;;  %v319_v22 = vpop.f32.mrb[3].mxu1  ;;  %v177_v23 = vadd.f32 %v244_v12, %v176_v19  ;;  %v315_v24 = vpop.f32.mrb[3].mxu0 }
 0x120   :  { %v276_v25 = vpack.c.bf16 %v185_v21, %v182_v20  ;;  %v271_v26 = vpack.c.bf16 %v177_v23, %v174_v16 }
 0x122   :  { %283 = vst [vmem:[#allocation7 + $0x8] sm:$0xff] %v276_v25   ;;  %272 = vst [vmem:[#allocation7] sm:$0xff] %v271_v26  }
 0x123   :  { %v189_v27 = vpop.f32.mrb[4].mxu1 }
 0x124   :  { %v322_v28 = vpop.f32.mrb[5].mxu1  ;;  %v190_v30 = vadd.f32 %v244_v12, %v189_v27 }
 0x125   :  { %v192_v29 = vpop.f32.mrb[6].mxu1 }
 0x126   :  { %v193_v31 = vadd.f32 %v244_v12, %v192_v29  ;;  %v323_v32 = vpop.f32.mrb[7].mxu1 }
 0x128   :  { %v281_v33 = vpack.c.bf16 %v193_v31, %v190_v30 }
 0x12a   :  { %284 = vst [vmem:[#allocation7 + $0x10] sm:$0xff] %v281_v33  }
 0x12b   :  { %413 = shalt.err (!%p410_p6)
}
 0x12c   :  { %s414_s15 = scalar_lea.hbm %s511_s3, 384 }
 0x12d   :  { %p415_p7 = scmp.ne.s32.totalorder %s511_s3, %s414_s15  ;;  %p418_p8 = scmp.lt.u32.totalorder %s414_s15, %s511_s3 }
 0x12f   :  { %p420_p9 = pnand %p418_p8, %p415_p7 }
 0x131   :  { %423 = shalt.err (!%p420_p9)
}
 0x132   :  { %237 = dma.vmem_to_hbm [thread:$0]  %s232_s11, 384, %s511_s3, [#allocation4], %s431_s22, %s431_s22, %s432_s23  }
 0x133   :  { %428 = dma.done.wait [#allocation4], 384  }
 0x134   :  { %429 = vsyncadd [#allocation4], 4294966912 }
 0x135   :  { %241 = vsyncpa [#allocation3], 1 }
 0x136   :  { %242 = vsyncpa [#allocation6], 1 }
 0x137   :  { %243 = vsyncpa [#allocation4], 1 }

</bundles_post_ra>
